<compile_context>
chip_gen: v6e
topology: v6e:2x2x1
jax: 0.10.0
libtpu: 0.0.40
codegen_flags: <defaults>
</compile_context>

<pallas_src>
import functools

import jax
import jax.numpy as jnp
from jax import lax
from jax.experimental import pallas as pl
from jax.experimental.pallas import tpu as pltpu

ALPHA = 0.25
GAMMA = 2.0          # compile-time; folded into an explicit square below
_PAD_X = 100.0       # neutral pad: sigmoid(100) == 1 in f32  ->  (1-pt)^2 == 0 exactly
_PAD_Y = 1.0


def _weighted_f32(x_native, y_native):
    """Elementwise alpha_t * (1 - pt)^2 * BCEWithLogits, in f32 (pure jnp)."""
    x = x_native.astype(jnp.float32)
    y = y_native.astype(jnp.float32)
    is_pos = y == 1.0
    alpha = jnp.where(is_pos, ALPHA, 1.0 - ALPHA)

    e = jnp.exp(-jnp.abs(x))             # shared by sigmoid and the log1p term
    s_abs = 1.0 / (1.0 + e)              # sigmoid(|x|)
    # Fused select chain (omp == 1 - pt):
    #   pt  = sigmoid(x) if y==1 else 1 - sigmoid(x)
    #   1 - sigmoid(|x|) == e * s_abs    (no cancellation)
    #   omp = e*s_abs  when (y==1) == (x>=0),  else  s_abs
    same = is_pos == (x >= 0.0)
    omp = s_abs * jnp.where(same, e, 1.0)

    # Numerically stable BCE with logits (== torch BCEWithLogitsLoss, 'none'):
    ce = jnp.maximum(x, 0.0) - x * y + jnp.log1p(e)
    return alpha * (omp * omp) * ce      # gamma=2 -> a single VPU multiply


def _focal_partial_kernel(x_ref, y_ref, out_ref, *, tm, lane, out_rows):
    """Writes a lane-dense (out_rows, lane) partial sum for this block."""
    if out_rows == 8 and tm > 8:
        # Loop over (8, lane) row-chunks; the whole chain + accumulator stay in
        # vregs, nothing tile-sized is materialized in VMEM.
        n_chunks = tm // 8

        def body(c, acc):
            r = pl.multiple_of(c * 8, 8)
            return acc + _weighted_f32(x_ref[pl.ds(r, 8), :], y_ref[pl.ds(r, 8), :])

        acc = lax.fori_loop(0, n_chunks, body,
                            jnp.zeros((8, lane), jnp.float32),
                            unroll=min(4, n_chunks))
        out_ref[...] = acc
    elif out_rows == 8:      # tm == 8: single chunk
        out_ref[...] = _weighted_f32(x_ref[...], y_ref[...])
    else:                    # tiny full-extent block (tm < 8) -> (1, lane) partial
        out_ref[...] = _weighted_f32(x_ref[...], y_ref[...]).sum(axis=0, keepdims=True)


def focal_loss(logits, label, reduction="mean"):
    """FocalLoss.forward equivalent.  logits/label: (N, ...) with >= 2 dims.

    `label` may be passed in any dtype (bool / int8 / bf16 / f32); it is used in
    its native dtype end-to-end (cast to f32 happens in-kernel), so narrow label
    dtypes directly cut HBM traffic.
    """
    assert logits.shape == label.shape
    shape = logits.shape
    assert len(shape) >= 2, "FocalLoss sums over dim=1; need >= 2 dims"
    N = shape[0]
    rest = 1
    for d in shape[2:]:
        rest *= d
    total = 1
    for d in shape:
        total *= d

    x_flat = logits.reshape(-1)
    y_flat = label.reshape(-1)           # native dtype passthrough (no wrapper cast)

    # ---- Lane-dense 2D view (no copy on the common, 128-divisible path) -----
    LANE = 0
    for cand in (1024, 512, 256, 128):
        if total % cand == 0:
            LANE = cand
            break
    if LANE:
        rows = total // LANE             # reshape only -> zero extra HBM traffic
    else:
        # Rare fallback: pad the partial last lane-row with NEUTRAL values whose
        # focal term is exactly 0 (sigmoid(100)==1 in f32), so no in-kernel mask.
        LANE = 128
        rows = -(-total // LANE)
        pad = rows * LANE - total
        x_flat = jnp.pad(x_flat, (0, pad), constant_values=_PAD_X)
        y_flat = jnp.pad(y_flat, (0, pad), constant_values=_PAD_Y)
    x2 = x_flat.reshape(rows, LANE)
    y2 = y_flat.reshape(rows, LANE)

    # ---- Row tiling (dtype-aware ~2 MiB per input block; v7x VMEM-safe) -----
    itembytes = max(logits.dtype.itemsize, label.dtype.itemsize)
    block_elems = (2 * 1024 * 1024) // itembytes
    tm_cap = max(8, (block_elems // LANE // 8) * 8)

    if rows < 8:
        TM, grid_m, out_rows = rows, 1, 1             # full-extent single block
    else:
        rows8 = (rows // 8) * 8
        TM = min(tm_cap, rows8)
        grid_m = rows8 // TM
        if grid_m < 2 and rows8 >= 16:
            TM = max(8, (rows8 // 16) * 8)            # >=2 blocks: both v7x cores
            grid_m = rows8 // TM
        out_rows = 8
    used_rows = grid_m * TM

    kernel = functools.partial(_focal_partial_kernel, tm=TM, lane=LANE, out_rows=out_rows)

    bytes_accessed = (used_rows * LANE * (logits.dtype.itemsize + label.dtype.itemsize)
                      + grid_m * out_rows * LANE * 4)
    cost = pl.CostEstimate(flops=14 * used_rows * LANE,
                           transcendentals=2 * used_rows * LANE,
                           bytes_accessed=bytes_accessed)

    partials = pl.pallas_call(
        kernel,
        out_shape=jax.ShapeDtypeStruct((grid_m * out_rows, LANE), jnp.float32),
        grid_spec=pltpu.PrefetchScalarGridSpec(
            num_scalar_prefetch=0,
            grid=(grid_m,),
            in_specs=[
                pl.BlockSpec((TM, LANE), lambda i: (i, 0)),
                pl.BlockSpec((TM, LANE), lambda i: (i, 0)),
            ],
            out_specs=pl.BlockSpec((out_rows, LANE), lambda i: (i, 0)),
        ),
        compiler_params=pltpu.CompilerParams(
            dimension_semantics=("parallel",),        # disjoint partials -> megacore-safe
            vmem_limit_bytes=32 * 1024 * 1024,        # fits v7x's 64 MiB with headroom
        ),
        cost_estimate=cost,
    )(x2, y2)

    total_sum = jnp.sum(partials)                     # tiny reduction outside the kernel
    if used_rows < rows:
        # Small row tail (< one block): plain JAX, avoids a full-array pad copy.
        total_sum = total_sum + jnp.sum(_weighted_f32(x2[used_rows:], y2[used_rows:]))

    # loss = (alpha * (1-pt)^gamma * ce).sum(dim=1); 'mean' divides by N * prod(shape[2:]).
    if reduction == "mean":
        return total_sum / jnp.float32(N * rest)
    if reduction == "sum":
        return total_sum
    # TODO(synk): reduction='none' returns a (N, *spatial) tensor; only 'mean'/'sum' kernelized.
    raise NotImplementedError(reduction)


def _focal_loss_ref(logits, label):
    """Pure-JAX reference of the PyTorch forward (reduction='mean')."""
    x = logits.astype(jnp.float32)
    y = label.astype(jnp.float32)
    alpha = jnp.where(y == 1.0, ALPHA, 1.0 - ALPHA)
    p = jax.nn.sigmoid(x)
    pt = jnp.where(y == 1.0, p, 1.0 - p)
    ce = jnp.maximum(x, 0.0) - x * y + jnp.log1p(jnp.exp(-jnp.abs(x)))
    loss = (alpha * (1.0 - pt) ** GAMMA * ce).sum(axis=1)
    return loss.mean()


if __name__ == "__main__":
    key = jax.random.PRNGKey(0)

    # Primary small shape from the module spec (single-block path).
    # Extra shapes exercise the chunked multi-block path, the row-tail path and
    # the rare neutral-pad path.
    shapes = [(2, 4, 16, 16), (4, 8, 32, 32), (3, 3, 4, 32), (2, 3, 5, 7)]
    for idx, shp in enumerate(shapes):
        k1, k2 = jax.random.split(jax.random.fold_in(key, idx))
        logits = jax.random.normal(k1, shp, dtype=jnp.float32)
        label = jax.random.bernoulli(k2, p=0.3, shape=shp).astype(jnp.float32)

        out = focal_loss(logits, label, reduction="mean")
        out = jax.block_until_ready(out)

        ref = _focal_loss_ref(logits, label)
        assert jnp.allclose(out, ref, rtol=1e-5, atol=1e-6), (shp, out, ref)

    print("KERNEL_OK")
</pallas_src>

<mosaic_0001>
module attributes {stable_mosaic.version = 11 : i64} {
  func.func @_focal_partial_kernel(%arg0: i32, %arg1: memref<2x1024xf32, #tpu.memory_space<vmem>>, %arg2: memref<2x1024xf32, #tpu.memory_space<vmem>>, %arg3: memref<1x1024xf32, #tpu.memory_space<vmem>>) attributes {dimension_semantics = [#tpu.dimension_semantics<parallel>], iteration_bounds = array<i64: 1>, scalar_prefetch = 0 : i64, scratch_operands = 0 : i64, tpu.core_type = #tpu.core_type<tc>, window_params = [{transform_indices = @transform_0, window_bounds = array<i64: 2, 1024>}, {transform_indices = @transform_1, window_bounds = array<i64: 2, 1024>}, {transform_indices = @transform_2, window_bounds = array<i64: 1, 1024>}]} {
    %c0 = arith.constant 0 : index
    %c0_0 = arith.constant 0 : index
    %0 = vector.load %arg1[%c0, %c0_0] : memref<2x1024xf32, #tpu.memory_space<vmem>>, vector<2x1024xf32>
    %c0_1 = arith.constant 0 : index
    %c0_2 = arith.constant 0 : index
    %1 = vector.load %arg2[%c0_1, %c0_2] : memref<2x1024xf32, #tpu.memory_space<vmem>>, vector<2x1024xf32>
    %cst = arith.constant 1.000000e+00 : f32
    %2 = vector.broadcast %cst : f32 to vector<2x1024xf32>
    %3 = arith.cmpf oeq, %1, %2 : vector<2x1024xf32>
    %cst_3 = arith.constant 2.500000e-01 : f32
    %cst_4 = arith.constant 7.500000e-01 : f32
    %4 = vector.broadcast %cst_3 : f32 to vector<2x1024xf32>
    %5 = vector.broadcast %cst_4 : f32 to vector<2x1024xf32>
    %6 = arith.select %3, %4, %5 : vector<2x1024xi1>, vector<2x1024xf32>
    %7 = math.absf %0 : vector<2x1024xf32>
    %cst_5 = arith.constant 0.000000e+00 : f32
    %8 = vector.broadcast %cst_5 : f32 to vector<2x1024xf32>
    %9 = arith.subf %8, %7 : vector<2x1024xf32>
    %10 = math.exp %9 : vector<2x1024xf32>
    %cst_6 = arith.constant 1.000000e+00 : f32
    %11 = vector.broadcast %cst_6 : f32 to vector<2x1024xf32>
    %12 = arith.addf %11, %10 : vector<2x1024xf32>
    %cst_7 = arith.constant 1.000000e+00 : f32
    %13 = vector.broadcast %cst_7 : f32 to vector<2x1024xf32>
    %14 = arith.divf %13, %12 : vector<2x1024xf32>
    %cst_8 = arith.constant 0.000000e+00 : f32
    %15 = vector.broadcast %cst_8 : f32 to vector<2x1024xf32>
    %16 = arith.cmpf oge, %0, %15 : vector<2x1024xf32>
    %17 = arith.xori %3, %16 : vector<2x1024xi1>
    %cst_9 = arith.constant dense<true> : vector<2x1024xi1>
    %18 = arith.xori %17, %cst_9 : vector<2x1024xi1>
    %cst_10 = arith.constant 1.000000e+00 : f32
    %19 = vector.broadcast %cst_10 : f32 to vector<2x1024xf32>
    %20 = arith.select %18, %10, %19 : vector<2x1024xi1>, vector<2x1024xf32>
    %21 = arith.mulf %14, %20 : vector<2x1024xf32>
    %cst_11 = arith.constant 0.000000e+00 : f32
    %22 = vector.broadcast %cst_11 : f32 to vector<2x1024xf32>
    %23 = arith.maximumf %0, %22 : vector<2x1024xf32>
    %24 = arith.mulf %0, %1 : vector<2x1024xf32>
    %25 = arith.subf %23, %24 : vector<2x1024xf32>
    %26 = math.log1p %10 : vector<2x1024xf32>
    %27 = arith.addf %25, %26 : vector<2x1024xf32>
    %28 = arith.mulf %21, %21 : vector<2x1024xf32>
    %29 = arith.mulf %6, %28 : vector<2x1024xf32>
    %30 = arith.mulf %29, %27 : vector<2x1024xf32>
    %cst_12 = arith.constant dense<0.000000e+00> : vector<1024xf32>
    %31 = vector.multi_reduction <add>, %30, %cst_12 [0] : vector<2x1024xf32> to vector<1024xf32>
    %32 = vector.shape_cast %31 : vector<1024xf32> to vector<1x1024xf32>
    %c0_13 = arith.constant 0 : index
    %c0_14 = arith.constant 0 : index
    %33 = vector.load %arg3[%c0_13, %c0_14] : memref<1x1024xf32, #tpu.memory_space<vmem>>, vector<1x1024xf32>
    tpu.vector_store %arg3[%c0_13, %c0_14], %32 {strides = array<i32>} : memref<1x1024xf32, #tpu.memory_space<vmem>>, vector<1x1024xf32>,
    return
  }
  func.func @transform_0(%arg0: i32) -> (i32, i32) {
    %c0_i32 = arith.constant 0 : i32
    %c0_i32_0 = arith.constant 0 : i32
    return %arg0, %c0_i32 : i32, i32
  }
  func.func @transform_1(%arg0: i32) -> (i32, i32) {
    %c0_i32 = arith.constant 0 : i32
    %c0_i32_0 = arith.constant 0 : i32
    return %arg0, %c0_i32 : i32, i32
  }
  func.func @transform_2(%arg0: i32) -> (i32, i32) {
    %c0_i32 = arith.constant 0 : i32
    %c0_i32_0 = arith.constant 0 : i32
    return %arg0, %c0_i32 : i32, i32
  }
}

</mosaic_0001>

<bundles_post_ra>
// kernel: tpu_custom_call.1
= control target key start
LH: loop header
LB: loop body
LE: loop exit
PB: predicated region body
PF: predicated region fallthrough
CT: control target
= control target key end

     0   :  { %7 = vsyncpa [#allocation3], 0  ;;  %s420_s0 = inlined_call_operand.hbm [shape: f32[2,1024], index: 0, kind: input, shape index: {}]   ;;  %s421_s1 = inlined_call_operand.hbm [shape: f32[2,1024], index: 1, kind: input, shape index: {}]   ;;  %s422_s2 = inlined_call_operand.hbm [shape: f32[1,1024], index: 2, kind: output, shape index: {}]  }
   0x1   :  { %8 = vsyncpa [#allocation6], 0 }
   0x2   :  { %9 = vsyncpa [#allocation4], 0  ;;  %s361_s9 = smov [#allocation2]   ;;  %s362_s11 = smov [#allocation5]  }
   0x3   :  { %s16_s10 = sshll.u32 %s361_s9, 4  ;;  %s26_s12 = sshll.u32 %s362_s11, 4  ;;  %s17_s10 = int_to_ptr.vmem [resolvable:$true] %s16_s10  ;;  %s27_s12 = int_to_ptr.vmem [resolvable:$true] %s26_s12 }
   0x4   :  { %s303_s13 = scalar_lea.vmem %s17_s10, 256  ;;  %p308_p1 = scmp.lt.s32.totalorder %s17_s10, %s17_s10 }
   0x5   :  { %p304_p0 = scmp.ne.s32.totalorder %s17_s10, %s303_s13  ;;  %p309_p2 = scmp.lt.s32.totalorder %s303_s13, %s303_s13 }
   0x7   :  { %p310_p3 = por %p309_p2, %p308_p1 }
   0x9   :  { %p311_p4 = pnand %p310_p3, %p304_p0 }
   0xb   :  { %314 = shalt.err (!%p311_p4)
}
   0xc   :  { %19 = dma.hbm_to_vmem [thread:$0]  %s420_s0, 256, %s17_s10, [#allocation3]  }
   0xd   :  { %s323_s16 = scalar_lea.vmem %s27_s12, 256  ;;  %p328_p6 = scmp.lt.s32.totalorder %s27_s12, %s27_s12 }
   0xe   :  { %p324_p5 = scmp.ne.s32.totalorder %s27_s12, %s323_s16  ;;  %p329_p7 = scmp.lt.s32.totalorder %s323_s16, %s323_s16 }
  0x10   :  { %p330_p8 = por %p329_p7, %p328_p6 }
  0x12   :  { %p331_p9 = pnand %p330_p8, %p324_p5 }
  0x14   :  { %334 = shalt.err (!%p331_p9)
}
  0x15   :  { %29 = dma.hbm_to_vmem [thread:$0]  %s421_s1, 256, %s27_s12, [#allocation6]  }
  0x16   :  { %355 = dma.done.wait [#allocation3], 256  }
  0x17   :  { %356 = vsyncadd [#allocation3], 4294967040 }
  0x18   :  { %357 = dma.done.wait [#allocation6], 256  }
  0x19   :  { %358 = vsyncadd [#allocation6], 4294967040  ;;  %v36_v0 = vld [vmem:[#allocation2] sm:$0xff]  ;;  %v37_v1 = vld [vmem:[#allocation2 + $0x8] sm:$0xff]  ;;  %vm363_vm6 = vmmov 1   ;;  %v106_v20 = vlaneseq  ;;  %v365_v35 = vmov 0.75  }
  0x1a   :  { %v44_v2 = vand.u32 2147483647, %v36_v0  ;;  %v45_v3 = vand.u32 2147483647, %v37_v1  ;;  %v38_v11 = vld [vmem:[#allocation5] sm:$0xff]  ;;  %v39_v13 = vld [vmem:[#allocation5 + $0x8] sm:$0xff] }
  0x1b   :  { %vm40_vm0 = vcmp.eq.f32.partialorder %v38_v11, 1.0  ;;  %vm58_vm1 = vcmp.ge.f32.partialorder %v36_v0, 0.0  ;;  %vm41_vm2 = vcmp.eq.f32.partialorder %v39_v13, 1.0  ;;  %vm59_vm3 = vcmp.ge.f32.partialorder %v37_v1, 0.0  ;;  %s367_s0 = smov [#allocation7]  }
  0x1c   :  { %v46_v4 = vsub.f32 0.0, %v44_v2  ;;  %v47_v5 = vsub.f32 0.0, %v45_v3  ;;  %vm60_vm4 = vmxor %vm40_vm0, %vm58_vm1  ;;  %v364_v18 = vmov 1983009808   ;;  %v70_v21 = vmul.f32 %v38_v11, %v36_v0  ;;  %s266_s1 = sshll.u32 %s367_s0, 4  ;;  %s267_s1 = int_to_ptr.vmem [resolvable:$true] %s266_s1 }
  0x1d   :  { %vm61_vm5 = vmxor %vm41_vm2, %vm59_vm3  ;;  %v104_v19 = vunpack.c.l.s4 %v364_v18  ;;  %v68_v24 = vmax.f32 %v36_v0, 0.0  ;;  %v69_v28 = vmax.f32 %v37_v1, 0.0  ;;  %v71_v29 = vmul.f32 %v39_v13, %v37_v1  ;;  %s335_s19 = scalar_lea.vmem %s267_s1, 128  ;;  %p340_p11 = scmp.lt.s32.totalorder %s267_s1, %s267_s1 }
  0x1e   :  { %v48_v6 = vmul.f32 1.442695, %v46_v4  ;;  %v50_v7 = vmul.f32 1.442695, %v47_v5  ;;  %vm391_vm7 = vmxor %vm60_vm4, %vm363_vm6  ;;  %v403_v33 = vshrl.u32 %v106_v20, 7  ;;  %v42_v36 = vsel %vm40_vm0, 0.25, %v365_v35  ;;  %p336_p10 = scmp.ne.s32.totalorder %s267_s1, %s335_s19  ;;  %p341_p12 = scmp.lt.s32.totalorder %s335_s19, %s335_s19 }
  0x1f   :  { %vm395_vm8 = vmxor %vm61_vm5, %vm363_vm6  ;;  %v105_v32 = vunpack.c.0.s8 %v104_v19  ;;  %v43_v37 = vsel %vm41_vm2, 0.25, %v365_v35  ;;  %v72_v42 = vsub.f32 %v68_v24, %v70_v21  ;;  %v73_v45 = vsub.f32 %v69_v28, %v71_v29 }
  0x20   :  { %283 = vpow2.f32 %v48_v6  ;;  %v366_v58 = vmov 1966171168   ;;  %vm144_vm11 = vcmask 1041408   ;;  %p342_p13 = por %p341_p12, %p340_p11 }
  0x21   :  { %285 = vpow2.f32 %v50_v7  ;;  %v108_v55 = vsub.s32 %v105_v32, %v403_v33  ;;  %v214_v59 = vunpack.c.l.s4 %v366_v58 }
  0x22   :  { %p343_p0 = pnand %p342_p13, %p336_p10 }
  0x23   :  { %v215_v4 = vunpack.c.0.s8 %v214_v59 }
  0x2d   :  { %v284_v8 = vpop.eup %283 }
  0x2e   :  { %v286_v9 = vpop.eup %285  ;;  %v52_v10 = vadd.f32 1.0, %v284_v8  ;;  %v77_v14 = vmul.f32 -0.5, %v284_v8  ;;  %v64_v23 = vsel %vm391_vm7, %v284_v8, 1.0  ;;  %v80_v25 = vand.u32 2147483647, %v284_v8 }
  0x2f   :  { %v53_v12 = vadd.f32 1.0, %v286_v9  ;;  %v86_v15 = vmul.f32 -0.5, %v286_v9  ;;  %v65_v27 = vsel %vm395_vm8, %v286_v9, 1.0  ;;  %v89_v30 = vand.u32 2147483647, %v286_v9 }
  0x30   :  { %287 = vrcp.f32 %v52_v10  ;;  %v78_v22 = vadd.f32 1.0, %v77_v14  ;;  %vm81_vm9 = vcmp.lt.f32.partialorder %v80_v25, 0.0004427343 }
  0x31   :  { %289 = vrcp.f32 %v53_v12  ;;  %v87_v26 = vadd.f32 1.0, %v86_v15  ;;  %vm90_vm10 = vcmp.lt.f32.partialorder %v89_v30, 0.0004427343 }
  0x32   :  { %291 = vlog2.f32 %v52_v10  ;;  %v79_v39 = vmul.f32 %v284_v8, %v78_v22 }
  0x33   :  { %293 = vlog2.f32 %v53_v12  ;;  %v88_v43 = vmul.f32 %v286_v9, %v87_v26 }
  0x3d   :  { %v288_v31 = vpop.eup %287 }
  0x3e   :  { %v290_v34 = vpop.eup %289  ;;  %v66_v38 = vmul.f32 %v288_v31, %v64_v23 }
  0x3f   :  { %v292_v40 = vpop.eup %291  ;;  %v67_v41 = vmul.f32 %v290_v34, %v65_v27 }
  0x40   :  { %v294_v44 = vpop.eup %293  ;;  %v76_v46 = vmul.f32 0.6931472, %v292_v40  ;;  %v94_v47 = vmul.f32 %v66_v38, %v66_v38 }
  0x41   :  { %v85_v48 = vmul.f32 0.6931472, %v294_v44  ;;  %v95_v49 = vmul.f32 %v67_v41, %v67_v41 }
  0x42   :  { %v82_v50 = vsel %vm81_vm9, %v79_v39, %v76_v46  ;;  %v96_v51 = vmul.f32 %v94_v47, %v42_v36 }
  0x43   :  { %v91_v52 = vsel %vm90_vm10, %v88_v43, %v85_v48  ;;  %v92_v53 = vadd.f32 %v82_v50, %v72_v42  ;;  %v97_v54 = vmul.f32 %v95_v49, %v43_v37 }
  0x44   :  { %v93_v56 = vadd.f32 %v91_v52, %v73_v45 }
  0x45   :  { %v98_v57 = vmul.f32 %v96_v51, %v92_v53 }
  0x46   :  { %v99_v60 = vmul.f32 %v97_v54, %v93_v56  ;;  %v218_v56 = vsub.s32 %v215_v4, %v403_v33 }
  0x47   :  { %v102_v61 = vcombine.high %v98_v57, %v98_v57  ;;  %v109_v62 = vrot.slane %v98_v57, %v108_v55 }
  0x48   :  { %v119_v63 = vcombine.high %v99_v60, %v99_v60  ;;  %v126_v0 = vrot.slane %v99_v60, %v108_v55 }
  0x49   :  { %v116_v1 = vrot.slane %v102_v61, %v108_v55  ;;  %v117_v2 = vcombine.high %v109_v62, %v109_v62  ;;  %v145_v3 = vsel %vm144_vm11, %v109_v62, 0.0 }
  0x4a   :  { %v133_v5 = vrot.slane %v119_v63, %v108_v55  ;;  %v134_v6 = vcombine.high %v126_v0, %v126_v0  ;;  %v146_v7 = vrot.slane %v145_v3, 4  ;;  %v173_v8 = vsel %vm144_vm11, %v126_v0, 0.0 }
  0x4b   :  { %v118_v9 = vcombine.high %v116_v1, %v116_v1  ;;  %v152_v10 = vsel %vm144_vm11, %v117_v2, 0.0  ;;  %v159_v11 = vsel %vm144_vm11, %v116_v1, 0.0  ;;  %v174_v12 = vrot.slane %v173_v8, 4 }
  0x4c   :  { %v135_v13 = vcombine.high %v133_v5, %v133_v5  ;;  %v147_v14 = vadd.f32 %v146_v7, %v145_v3  ;;  %v153_v15 = vrot.slane %v152_v10, 4  ;;  %v160_v16 = vrot.slane %v159_v11, 4 }
  0x4d   :  { %v166_v17 = vsel %vm144_vm11, %v118_v9, 0.0  ;;  %v175_v18 = vadd.f32 %v174_v12, %v173_v8  ;;  %v180_v19 = vsel %vm144_vm11, %v134_v6, 0.0  ;;  %v187_v20 = vsel %vm144_vm11, %v133_v5, 0.0 }
  0x4e   :  { %v148_v21 = vrot.slane %v147_v14, 2  ;;  %v154_v22 = vadd.f32 %v153_v15, %v152_v10  ;;  %v161_v23 = vadd.f32 %v160_v16, %v159_v11  ;;  %v167_v24 = vrot.slane %v166_v17, 4 }
  0x4f   :  { %v176_v25 = vrot.slane %v175_v18, 2  ;;  %v181_v26 = vrot.slane %v180_v19, 4  ;;  %v188_v27 = vrot.slane %v187_v20, 4  ;;  %v194_v28 = vsel %vm144_vm11, %v135_v13, 0.0 }
  0x50   :  { %v149_v29 = vadd.f32 %v148_v21, %v147_v14  ;;  %v155_v30 = vrot.slane %v154_v22, 2  ;;  %v162_v31 = vrot.slane %v161_v23, 2  ;;  %v168_v32 = vadd.f32 %v167_v24, %v166_v17 }
  0x51   :  { %v177_v34 = vadd.f32 %v176_v25, %v175_v18  ;;  %v182_v35 = vadd.f32 %v181_v26, %v180_v19  ;;  %v189_v36 = vadd.f32 %v188_v27, %v187_v20  ;;  %v195_v37 = vrot.slane %v194_v28, 4 }
  0x52   :  { %v150_v38 = vrot.slane %v149_v29, 1  ;;  %v156_v39 = vadd.f32 %v155_v30, %v154_v22  ;;  %v163_v40 = vadd.f32 %v162_v31, %v161_v23  ;;  %v169_v41 = vrot.slane %v168_v32, 2 }
  0x53   :  { %v178_v42 = vrot.slane %v177_v34, 1  ;;  %v183_v43 = vrot.slane %v182_v35, 2  ;;  %v190_v44 = vrot.slane %v189_v36, 2  ;;  %v196_v45 = vadd.f32 %v195_v37, %v194_v28 }
  0x54   :  { %v151_v46 = vadd.f32 %v150_v38, %v149_v29  ;;  %v157_v47 = vrot.slane %v156_v39, 1  ;;  %v164_v48 = vrot.slane %v163_v40, 1  ;;  %v170_v49 = vadd.f32 %v169_v41, %v168_v32 }
  0x55   :  { %v184_v50 = vadd.f32 %v183_v43, %v182_v35  ;;  %v191_v51 = vadd.f32 %v190_v44, %v189_v36  ;;  %v197_v52 = vrot.slane %v196_v45, 2  ;;  %v179_v57 = vadd.f32 %v178_v42, %v177_v34 }
  0x56   :  { %v158_v53 = vadd.f32 %v157_v47, %v156_v39  ;;  %v165_v54 = vadd.f32 %v164_v48, %v163_v40  ;;  %v171_v55 = vrot.slane %v170_v49, 1 }
  0x57   :  { %v185_v58 = vrot.slane %v184_v50, 1  ;;  %v192_v59 = vrot.slane %v191_v51, 1  ;;  %v198_v60 = vadd.f32 %v197_v52, %v196_v45 }
  0x58   :  { %v172_v61 = vadd.f32 %v171_v55, %v170_v49  ;;  %v209_v62 = vcombine.low %v151_v46, %v158_v53 }
  0x59   :  { %v186_v63 = vadd.f32 %v185_v58, %v184_v50  ;;  %v193_v0 = vadd.f32 %v192_v59, %v191_v51  ;;  %v199_v1 = vrot.slane %v198_v60, 1 }
  0x5a   :  { %v210_v2 = vcombine.low %v165_v54, %v172_v61  ;;  %v219_v3 = vrot.slane %v209_v62, %v218_v56 }
  0x5b   :  { %v200_v5 = vadd.f32 %v199_v1, %v198_v60  ;;  %v211_v6 = vcombine.low %v179_v57, %v186_v63 }
  0x5c   :  { %v226_v7 = vrot.slane %v210_v2, %v218_v56 }
  0x5d   :  { %v212_v8 = vcombine.low %v193_v0, %v200_v5  ;;  %v233_v9 = vrot.slane %v211_v6, %v218_v56 }
  0x5e   :  { %v241_v10 = vcombine.low %v219_v3, %v226_v7 }
  0x5f   :  { %v240_v11 = vrot.slane %v212_v8, %v218_v56 }
  0x60   :  { %v249_v33 = vrot.slane %v241_v10, %v218_v56 }
  0x61   :  { %v242_v12 = vcombine.low %v233_v9, %v240_v11 }
  0x63   :  { %v256_v4 = vrot.slane %v242_v12, %v218_v56 }
  0x65   :  { %v257_v13 = vcombine.low %v249_v33, %v256_v4 }
  0x67   :  { %259 = vst [vmem:[#allocation7] sm:$0xff] %v257_v13 }
  0x68   :  { %346 = shalt.err (!%p343_p0)
}
  0x69   :  { %269 = dma.vmem_to_hbm [thread:$0]  %s267_s1, 128, %s422_s2, [#allocation4]  }
  0x6a   :  { %359 = dma.done.wait [#allocation4], 128  }
  0x6b   :  { %360 = vsyncadd [#allocation4], 4294967168 }
  0x6c   :  { %273 = vsyncpa [#allocation3], 1 }
  0x6d   :  { %274 = vsyncpa [#allocation6], 1 }
  0x6e   :  { %275 = vsyncpa [#allocation4], 1 }

</bundles_post_ra>
